<compile_context>
chip_gen: v5e
topology: v5e:2x2
jax: 0.10.0
libtpu: 0.0.40
codegen_flags: <defaults>
</compile_context>

<pallas_src>
import jax
import jax.numpy as jnp
from jax import lax
from jax.experimental import pallas as pl
from jax.experimental.pallas import tpu as pltpu


def _make_kernel(B_t, H, WCin, WCmid, WCout, fuse_k):
    """Build the kernel body for a fixed batch tile / slab geometry."""
    S = H + 2                 # rows per image in the stacked padded slabs
    Macc = B_t * S - 2        # rows of the accumulator (valid + few garbage rows)

    def kernel(x_ref, w1_ref, b1_ref, w2_ref, b2_ref, out_ref,
               xpad, midpad, *cats):
        # x_ref  : (B_t, H, WCin)  f32 input slabs (also the residual)
        # w1_ref : (3, WCin, WCmid) or (3*WCin, WCmid)  bf16, BN1 scale folded
        # b1_ref : (1, WCmid) f32 ; w2_ref / b2_ref analogous for conv2
        # out_ref: (B_t, H, WCout) f32
        # xpad   : (B_t*S, WCin)  bf16 scratch, per-image [zero | H data | zero]
        # midpad : (B_t*S, WCmid) bf16 scratch, same layout
        # cats   : () or ((Macc, 3*WCin), (Macc, 3*WCmid)) bf16 fused-K staging
        zx = jnp.zeros((1, WCin), jnp.bfloat16)
        zm = jnp.zeros((1, WCmid), jnp.bfloat16)

        # Stage inputs: per-image data rows (cast to bf16) + 1-row zero halos.
        for b in range(B_t):
            base = b * S
            xpad[base:base + 1, :] = zx
            xpad[base + 1:base + 1 + H, :] = x_ref[b].astype(jnp.bfloat16)
            xpad[base + H + 1:base + H + 2, :] = zx
            midpad[base:base + 1, :] = zm
            midpad[base + H + 1:base + H + 2, :] = zm

        def conv(pad, w_ref, cat):
            # acc row r = sum_dy pad[r+dy] @ w[dy]; rows b*S + h (h<H) are the
            # valid outputs of image b, the 2 rows per image boundary are junk.
            if fuse_k:
                WC = pad.shape[1]
                for dy in range(3):
                    cat[:, dy * WC:(dy + 1) * WC] = pad[dy:dy + Macc, :]
                return jnp.dot(cat[...], w_ref[...],
                               preferred_element_type=jnp.float32)
            acc = jnp.dot(pad[0:Macc, :], w_ref[0],
                          preferred_element_type=jnp.float32)
            acc = acc + jnp.dot(pad[1:Macc + 1, :], w_ref[1],
                                preferred_element_type=jnp.float32)
            acc = acc + jnp.dot(pad[2:Macc + 2, :], w_ref[2],
                                preferred_element_type=jnp.float32)
            return acc

        cat1 = cats[0] if fuse_k else None
        cat2 = cats[1] if fuse_k else None

        # ---- conv1 + BN1(scale folded) + ReLU ----
        acc1 = conv(xpad, w1_ref, cat1)                      # (Macc, WCmid) f32
        mid = jnp.maximum(acc1 + b1_ref[...], 0.0).astype(jnp.bfloat16)
        for b in range(B_t):
            base = b * S
            midpad[base + 1:base + 1 + H, :] = mid[base:base + H, :]

        # ---- conv2 + BN2(scale folded) + identity residual + ReLU ----
        acc2 = conv(midpad, w2_ref, cat2)                    # (Macc, WCout) f32
        bias2 = b2_ref[...]
        for b in range(B_t):
            base = b * S
            out_ref[b] = jnp.maximum(
                acc2[base:base + H, :] + bias2 + x_ref[b], 0.0)

    return kernel


def _build_block_weights(w_hwio, scale, W):
    """Fold BN scale into conv weights and build per-dy block-shifted
    (W*Cin, W*Cout) weights implementing the 3 horizontal taps + zero padding.

    big[dy][jj*Cin + ci, j*Cout + co] = w[dy, dx, ci, co] * scale[co]
        where jj = j + dx - 1 (only if 0 <= jj < W).
    """
    Cin, Cout = w_hwio.shape[2], w_hwio.shape[3]
    wf = (w_hwio * scale[None, None, None, :]).astype(jnp.float32)
    bigs = []
    for dy in range(3):
        big4 = jnp.zeros((W, Cin, W, Cout), jnp.float32)
        for dx in range(3):
            # E[jj, j] = 1 iff jj == j + dx - 1  ->  diagonal k = 1 - dx
            E = jnp.eye(W, k=1 - dx, dtype=jnp.float32)
            big4 = big4 + E[:, None, :, None] * wf[dy, dx][None, :, None, :]
        bigs.append(big4.reshape(W * Cin, W * Cout))
    return jnp.stack(bigs)  # (3, W*Cin, W*Cout) f32


def _choose_batch_tile(N, H, target_rows=256):
    """Images per grid step: aim M ~ target_rows but keep >=2 grid steps
    (megacore balance on v7x) and require N % B_t == 0."""
    rows_per_image = H + 2
    bt = max(1, min(N, target_rows // rows_per_image))
    while bt > 1 and (N % bt != 0 or N // bt < 2):
        bt -= 1
    if N % bt != 0:
        bt = 1
    return bt


def _mxu_prefers_fused_k():
    """K=3*W*C dy-fusion helps 256-deep MXUs (v6e/v7x); keep per-dy K=W*C
    matmuls on 128-deep MXU generations (<= v5)."""
    try:
        kind = jax.devices()[0].device_kind.lower()
    except Exception:
        return True
    return not any(t in kind for t in ("v2", "v3", "v4", "v5"))


def basic_block_pallas(x_nhwc, w1_hwio, s1, b1, w2_hwio, s2, b2,
                       batch_tile=None, fuse_k=None):
    N, H, W, Cin = x_nhwc.shape
    Cmid = w1_hwio.shape[-1]
    Cout = w2_hwio.shape[-1]
    assert Cin == Cout, "identity residual requires inplanes == planes"
    WCin, WCmid, WCout = W * Cin, W * Cmid, W * Cout
    # NOTE: best when W*C is a multiple of 128 (unmasked full-lane stores).

    if fuse_k is None:
        fuse_k = _mxu_prefers_fused_k()
    B_t = batch_tile if batch_tile is not None else _choose_batch_tile(N, H)
    assert N % B_t == 0
    S = H + 2
    Macc = B_t * S - 2

    # One-time preprocessing: BN scale folded into bf16 block-shifted weights.
    w1big = _build_block_weights(w1_hwio, s1, W)          # (3, WCin,  WCmid)
    w2big = _build_block_weights(w2_hwio, s2, W)          # (3, WCmid, WCout)
    if fuse_k:
        w1big = w1big.reshape(3 * WCin, WCmid)
        w2big = w2big.reshape(3 * WCmid, WCout)
        w1_spec = pl.BlockSpec((3 * WCin, WCmid), lambda n: (0, 0))
        w2_spec = pl.BlockSpec((3 * WCmid, WCout), lambda n: (0, 0))
    else:
        w1_spec = pl.BlockSpec((3, WCin, WCmid), lambda n: (0, 0, 0))
        w2_spec = pl.BlockSpec((3, WCmid, WCout), lambda n: (0, 0, 0))
    w1big = w1big.astype(jnp.bfloat16)
    w2big = w2big.astype(jnp.bfloat16)
    b1t = jnp.tile(b1.astype(jnp.float32), W).reshape(1, WCmid)
    b2t = jnp.tile(b2.astype(jnp.float32), W).reshape(1, WCout)

    # Lane-dense slabs: (N, H, W*C).
    x_slab = x_nhwc.astype(jnp.float32).reshape(N, H, WCin)

    scratch_shapes = [pltpu.VMEM((B_t * S, WCin), jnp.bfloat16),
                      pltpu.VMEM((B_t * S, WCmid), jnp.bfloat16)]
    if fuse_k:
        scratch_shapes += [pltpu.VMEM((Macc, 3 * WCin), jnp.bfloat16),
                           pltpu.VMEM((Macc, 3 * WCmid), jnp.bfloat16)]

    # Rough double-buffered VMEM budget; only raise the scoped limit if needed.
    scratch_bytes = 2 * (B_t * S * (WCin + WCmid))
    if fuse_k:
        scratch_bytes += 2 * (Macc * 3 * (WCin + WCmid))
    est_vmem = (2 * (B_t * H * (WCin + WCout) * 4)                 # in/out blocks, x2 buffers
                + 2 * (2 * (w1big.size + w2big.size)               # bf16 weights, x2 buffers
                       + 4 * (WCmid + WCout))                      # f32 biases
                + scratch_bytes)
    cp_kwargs = dict(dimension_semantics=("parallel",))            # megacore split on v7x
    if est_vmem > 16 * 1024 * 1024:
        cp_kwargs["vmem_limit_bytes"] = int(min(est_vmem * 3 // 2,
                                                100 * 1024 * 1024))

    kernel = _make_kernel(B_t, H, WCin, WCmid, WCout, fuse_k)

    out_slab = pl.pallas_call(
        kernel,
        out_shape=jax.ShapeDtypeStruct((N, H, WCout), jnp.float32),
        grid_spec=pltpu.PrefetchScalarGridSpec(
            num_scalar_prefetch=0,
            grid=(N // B_t,),
            in_specs=[
                pl.BlockSpec((B_t, H, WCin), lambda n: (n, 0, 0)),
                w1_spec,
                pl.BlockSpec((1, WCmid), lambda n: (0, 0)),
                w2_spec,
                pl.BlockSpec((1, WCout), lambda n: (0, 0)),
            ],
            out_specs=pl.BlockSpec((B_t, H, WCout), lambda n: (n, 0, 0)),
            scratch_shapes=scratch_shapes,
        ),
        compiler_params=pltpu.CompilerParams(**cp_kwargs),
    )(x_slab, w1big, b1t, w2big, b2t)

    return out_slab.reshape(N, H, W, Cout)


# ---------------- pure-JAX reference (NCHW, matches PyTorch semantics) -------
def ref_basic_block(x_nchw, w1_oihw, g1, be1, m1, v1, w2_oihw, g2, be2, m2, v2,
                    eps=1e-5):
    def conv(x, w):
        return lax.conv_general_dilated(
            x, w, window_strides=(1, 1), padding=((1, 1), (1, 1)),
            dimension_numbers=('NCHW', 'OIHW', 'NCHW'))

    def bn(x, g, b, m, v):
        g = g[None, :, None, None]
        b = b[None, :, None, None]
        m = m[None, :, None, None]
        v = v[None, :, None, None]
        return (x - m) / jnp.sqrt(v + eps) * g + b

    out = jax.nn.relu(bn(conv(x_nchw, w1_oihw), g1, be1, m1, v1))
    out = bn(conv(out, w2_oihw), g2, be2, m2, v2)
    return jax.nn.relu(out + x_nchw)


if __name__ == "__main__":
    # Module config: inplanes = planes = cfg = 8, stride = 1, downsample = None
    # W * C = 128 -> lane-dense slabs; N = 4 exercises batch tiling (B_t = 2).
    N, C, H, W = 4, 8, 16, 16
    inplanes, cfg, planes = C, C, C
    eps = 1e-5

    key = jax.random.PRNGKey(0)
    ks = jax.random.split(key, 11)

    x_nchw = jax.random.normal(ks[0], (N, C, H, W), dtype=jnp.float32)

    # conv weights in PyTorch OIHW layout, deterministic init
    w1_oihw = 0.1 * jax.random.normal(ks[1], (cfg, inplanes, 3, 3), jnp.float32)
    w2_oihw = 0.1 * jax.random.normal(ks[2], (planes, cfg, 3, 3), jnp.float32)

    # BatchNorm parameters / running stats (inference mode), nontrivial values
    g1 = 1.0 + 0.1 * jax.random.normal(ks[3], (cfg,), jnp.float32)
    be1 = 0.1 * jax.random.normal(ks[4], (cfg,), jnp.float32)
    m1 = 0.05 * jax.random.normal(ks[5], (cfg,), jnp.float32)
    v1 = 1.0 + 0.1 * jax.random.uniform(ks[6], (cfg,), jnp.float32)

    g2 = 1.0 + 0.1 * jax.random.normal(ks[7], (planes,), jnp.float32)
    be2 = 0.1 * jax.random.normal(ks[8], (planes,), jnp.float32)
    m2 = 0.05 * jax.random.normal(ks[9], (planes,), jnp.float32)
    v2 = 1.0 + 0.1 * jax.random.uniform(ks[10], (planes,), jnp.float32)

    # ---- glue: layout conversion + BN folding (scale into weights, bias kept) ----
    x_nhwc = jnp.transpose(x_nchw, (0, 2, 3, 1))
    w1_hwio = jnp.transpose(w1_oihw, (2, 3, 1, 0))
    w2_hwio = jnp.transpose(w2_oihw, (2, 3, 1, 0))
    s1 = g1 / jnp.sqrt(v1 + eps)
    b1 = be1 - m1 * s1
    s2 = g2 / jnp.sqrt(v2 + eps)
    b2 = be2 - m2 * s2

    out_nhwc = basic_block_pallas(x_nhwc, w1_hwio, s1, b1, w2_hwio, s2, b2)
    out_nhwc = jax.block_until_ready(out_nhwc)
    out_nchw = jnp.transpose(out_nhwc, (0, 3, 1, 2))

    ref = ref_basic_block(x_nchw, w1_oihw, g1, be1, m1, v1,
                          w2_oihw, g2, be2, m2, v2, eps)
    ref = jax.block_until_ready(ref)

    assert out_nchw.shape == ref.shape == (N, C, H, W)
    # bf16 MXU operands (f32 accumulation) vs f32 reference -> loosened tolerance.
    assert jnp.allclose(out_nchw, ref, atol=5e-2, rtol=5e-2), \
        f"max abs diff {jnp.max(jnp.abs(out_nchw - ref))}"
    print("KERNEL_OK")
</pallas_src>

<mosaic_0001>
module attributes {stable_mosaic.version = 11 : i64} {
  func.func @kernel(%arg0: i32, %arg1: memref<2x16x128xf32, #tpu.memory_space<vmem>>, %arg2: memref<384x128xbf16, #tpu.memory_space<vmem>>, %arg3: memref<1x128xf32, #tpu.memory_space<vmem>>, %arg4: memref<384x128xbf16, #tpu.memory_space<vmem>>, %arg5: memref<1x128xf32, #tpu.memory_space<vmem>>, %arg6: memref<2x16x128xf32, #tpu.memory_space<vmem>>, %arg7: memref<36x128xbf16, #tpu.memory_space<vmem>>, %arg8: memref<36x128xbf16, #tpu.memory_space<vmem>>, %arg9: memref<34x384xbf16, #tpu.memory_space<vmem>>, %arg10: memref<34x384xbf16, #tpu.memory_space<vmem>>) attributes {dimension_semantics = [#tpu.dimension_semantics<parallel>], iteration_bounds = array<i64: 2>, scalar_prefetch = 0 : i64, scratch_operands = 4 : i64, tpu.core_type = #tpu.core_type<tc>, window_params = [{transform_indices = @transform_0, window_bounds = array<i64: 2, 16, 128>}, {pipeline_mode = #tpu.pipeline_mode<synchronous>, transform_indices = @transform_1, window_bounds = array<i64: 384, 128>}, {pipeline_mode = #tpu.pipeline_mode<synchronous>, transform_indices = @transform_2, window_bounds = array<i64: 1, 128>}, {pipeline_mode = #tpu.pipeline_mode<synchronous>, transform_indices = @transform_3, window_bounds = array<i64: 384, 128>}, {pipeline_mode = #tpu.pipeline_mode<synchronous>, transform_indices = @transform_4, window_bounds = array<i64: 1, 128>}, {transform_indices = @transform_5, window_bounds = array<i64: 2, 16, 128>}]} {
    %cst = arith.constant 0.000000e+00 : bf16
    %0 = vector.broadcast %cst : bf16 to vector<1x128xbf16>
    %cst_0 = arith.constant 0.000000e+00 : bf16
    %1 = vector.broadcast %cst_0 : bf16 to vector<1x128xbf16>
    %c0 = arith.constant 0 : index
    %c0_1 = arith.constant 0 : index
    %2 = vector.load %arg7[%c0, %c0_1] : memref<36x128xbf16, #tpu.memory_space<vmem>>, vector<1x128xbf16>
    tpu.vector_store %arg7[%c0, %c0_1], %0 {strides = array<i32>} : memref<36x128xbf16, #tpu.memory_space<vmem>>, vector<1x128xbf16>,
    %c0_2 = arith.constant 0 : index
    %c0_3 = arith.constant 0 : index
    %c0_4 = arith.constant 0 : index
    %3 = vector.load %arg1[%c0_2, %c0_3, %c0_4] : memref<2x16x128xf32, #tpu.memory_space<vmem>>, vector<1x16x128xf32>
    %4 = vector.shape_cast %3 : vector<1x16x128xf32> to vector<16x128xf32>
    %5 = arith.truncf %4 : vector<16x128xf32> to vector<16x128xbf16>
    %c1 = arith.constant 1 : index
    %c0_5 = arith.constant 0 : index
    %6 = vector.load %arg7[%c1, %c0_5] : memref<36x128xbf16, #tpu.memory_space<vmem>>, vector<16x128xbf16>
    tpu.vector_store %arg7[%c1, %c0_5], %5 {strides = array<i32>} : memref<36x128xbf16, #tpu.memory_space<vmem>>, vector<16x128xbf16>,
    %c17 = arith.constant 17 : index
    %c0_6 = arith.constant 0 : index
    %7 = vector.load %arg7[%c17, %c0_6] : memref<36x128xbf16, #tpu.memory_space<vmem>>, vector<1x128xbf16>
    tpu.vector_store %arg7[%c17, %c0_6], %0 {strides = array<i32>} : memref<36x128xbf16, #tpu.memory_space<vmem>>, vector<1x128xbf16>,
    %c0_7 = arith.constant 0 : index
    %c0_8 = arith.constant 0 : index
    %8 = vector.load %arg8[%c0_7, %c0_8] : memref<36x128xbf16, #tpu.memory_space<vmem>>, vector<1x128xbf16>
    tpu.vector_store %arg8[%c0_7, %c0_8], %1 {strides = array<i32>} : memref<36x128xbf16, #tpu.memory_space<vmem>>, vector<1x128xbf16>,
    %c17_9 = arith.constant 17 : index
    %c0_10 = arith.constant 0 : index
    %9 = vector.load %arg8[%c17_9, %c0_10] : memref<36x128xbf16, #tpu.memory_space<vmem>>, vector<1x128xbf16>
    tpu.vector_store %arg8[%c17_9, %c0_10], %1 {strides = array<i32>} : memref<36x128xbf16, #tpu.memory_space<vmem>>, vector<1x128xbf16>,
    %c18 = arith.constant 18 : index
    %c0_11 = arith.constant 0 : index
    %10 = vector.load %arg7[%c18, %c0_11] : memref<36x128xbf16, #tpu.memory_space<vmem>>, vector<1x128xbf16>
    tpu.vector_store %arg7[%c18, %c0_11], %0 {strides = array<i32>} : memref<36x128xbf16, #tpu.memory_space<vmem>>, vector<1x128xbf16>,
    %c1_12 = arith.constant 1 : index
    %c0_13 = arith.constant 0 : index
    %c0_14 = arith.constant 0 : index
    %11 = vector.load %arg1[%c1_12, %c0_13, %c0_14] : memref<2x16x128xf32, #tpu.memory_space<vmem>>, vector<1x16x128xf32>
    %12 = vector.shape_cast %11 : vector<1x16x128xf32> to vector<16x128xf32>
    %13 = arith.truncf %12 : vector<16x128xf32> to vector<16x128xbf16>
    %c19 = arith.constant 19 : index
    %c0_15 = arith.constant 0 : index
    %14 = vector.load %arg7[%c19, %c0_15] : memref<36x128xbf16, #tpu.memory_space<vmem>>, vector<16x128xbf16>
    tpu.vector_store %arg7[%c19, %c0_15], %13 {strides = array<i32>} : memref<36x128xbf16, #tpu.memory_space<vmem>>, vector<16x128xbf16>,
    %c35 = arith.constant 35 : index
    %c0_16 = arith.constant 0 : index
    %15 = vector.load %arg7[%c35, %c0_16] : memref<36x128xbf16, #tpu.memory_space<vmem>>, vector<1x128xbf16>
    tpu.vector_store %arg7[%c35, %c0_16], %0 {strides = array<i32>} : memref<36x128xbf16, #tpu.memory_space<vmem>>, vector<1x128xbf16>,
    %c18_17 = arith.constant 18 : index
    %c0_18 = arith.constant 0 : index
    %16 = vector.load %arg8[%c18_17, %c0_18] : memref<36x128xbf16, #tpu.memory_space<vmem>>, vector<1x128xbf16>
    tpu.vector_store %arg8[%c18_17, %c0_18], %1 {strides = array<i32>} : memref<36x128xbf16, #tpu.memory_space<vmem>>, vector<1x128xbf16>,
    %c35_19 = arith.constant 35 : index
    %c0_20 = arith.constant 0 : index
    %17 = vector.load %arg8[%c35_19, %c0_20] : memref<36x128xbf16, #tpu.memory_space<vmem>>, vector<1x128xbf16>
    tpu.vector_store %arg8[%c35_19, %c0_20], %1 {strides = array<i32>} : memref<36x128xbf16, #tpu.memory_space<vmem>>, vector<1x128xbf16>,
    %c0_21 = arith.constant 0 : index
    %c0_22 = arith.constant 0 : index
    %18 = vector.load %arg7[%c0_21, %c0_22] : memref<36x128xbf16, #tpu.memory_space<vmem>>, vector<34x128xbf16>
    %c0_23 = arith.constant 0 : index
    %c0_24 = arith.constant 0 : index
    %19 = vector.load %arg9[%c0_23, %c0_24] : memref<34x384xbf16, #tpu.memory_space<vmem>>, vector<34x128xbf16>
    tpu.vector_store %arg9[%c0_23, %c0_24], %18 {strides = array<i32>} : memref<34x384xbf16, #tpu.memory_space<vmem>>, vector<34x128xbf16>,
    %c1_25 = arith.constant 1 : index
    %c0_26 = arith.constant 0 : index
    %20 = vector.load %arg7[%c1_25, %c0_26] : memref<36x128xbf16, #tpu.memory_space<vmem>>, vector<34x128xbf16>
    %c0_27 = arith.constant 0 : index
    %c128 = arith.constant 128 : index
    %21 = vector.load %arg9[%c0_27, %c128] : memref<34x384xbf16, #tpu.memory_space<vmem>>, vector<34x128xbf16>
    tpu.vector_store %arg9[%c0_27, %c128], %20 {strides = array<i32>} : memref<34x384xbf16, #tpu.memory_space<vmem>>, vector<34x128xbf16>,
    %c2 = arith.constant 2 : index
    %c0_28 = arith.constant 0 : index
    %22 = vector.load %arg7[%c2, %c0_28] : memref<36x128xbf16, #tpu.memory_space<vmem>>, vector<34x128xbf16>
    %c0_29 = arith.constant 0 : index
    %c256 = arith.constant 256 : index
    %23 = vector.load %arg9[%c0_29, %c256] : memref<34x384xbf16, #tpu.memory_space<vmem>>, vector<34x128xbf16>
    tpu.vector_store %arg9[%c0_29, %c256], %22 {strides = array<i32>} : memref<34x384xbf16, #tpu.memory_space<vmem>>, vector<34x128xbf16>,
    %c0_30 = arith.constant 0 : index
    %c0_31 = arith.constant 0 : index
    %24 = vector.load %arg9[%c0_30, %c0_31] : memref<34x384xbf16, #tpu.memory_space<vmem>>, vector<34x384xbf16>
    %c0_32 = arith.constant 0 : index
    %c0_33 = arith.constant 0 : index
    %25 = vector.load %arg2[%c0_32, %c0_33] : memref<384x128xbf16, #tpu.memory_space<vmem>>, vector<384x128xbf16>
    %cst_34 = arith.constant dense<0.000000e+00> : vector<34x128xf32>
    %26 = tpu.matmul %24, %25, %cst_34 {dimension_numbers = #tpu.dot_dimension_numbers<[1], [0], [0], [1], [0, 0, 1, 1], [], []>} : vector<34x384xbf16>, vector<384x128xbf16>, vector<34x128xf32> -> vector<34x128xf32>
    %c0_35 = arith.constant 0 : index
    %c0_36 = arith.constant 0 : index
    %27 = vector.load %arg3[%c0_35, %c0_36] : memref<1x128xf32, #tpu.memory_space<vmem>>, vector<1x128xf32>
    %28 = vector.broadcast %27 : vector<1x128xf32> to vector<34x128xf32>
    %29 = arith.addf %26, %28 : vector<34x128xf32>
    %cst_37 = arith.constant 0.000000e+00 : f32
    %30 = vector.broadcast %cst_37 : f32 to vector<34x128xf32>
    %31 = arith.maximumf %29, %30 : vector<34x128xf32>
    %32 = arith.truncf %31 : vector<34x128xf32> to vector<34x128xbf16>
    %33 = vector.extract_strided_slice %32 {offsets = [0, 0], sizes = [16, 128], strides = [1, 1]} : vector<34x128xbf16> to vector<16x128xbf16>
    %c1_38 = arith.constant 1 : index
    %c0_39 = arith.constant 0 : index
    %34 = vector.load %arg8[%c1_38, %c0_39] : memref<36x128xbf16, #tpu.memory_space<vmem>>, vector<16x128xbf16>
    tpu.vector_store %arg8[%c1_38, %c0_39], %33 {strides = array<i32>} : memref<36x128xbf16, #tpu.memory_space<vmem>>, vector<16x128xbf16>,
    %35 = vector.extract_strided_slice %32 {offsets = [18, 0], sizes = [16, 128], strides = [1, 1]} : vector<34x128xbf16> to vector<16x128xbf16>
    %c19_40 = arith.constant 19 : index
    %c0_41 = arith.constant 0 : index
    %36 = vector.load %arg8[%c19_40, %c0_41] : memref<36x128xbf16, #tpu.memory_space<vmem>>, vector<16x128xbf16>
    tpu.vector_store %arg8[%c19_40, %c0_41], %35 {strides = array<i32>} : memref<36x128xbf16, #tpu.memory_space<vmem>>, vector<16x128xbf16>,
    %c0_42 = arith.constant 0 : index
    %c0_43 = arith.constant 0 : index
    %37 = vector.load %arg8[%c0_42, %c0_43] : memref<36x128xbf16, #tpu.memory_space<vmem>>, vector<34x128xbf16>
    %c0_44 = arith.constant 0 : index
    %c0_45 = arith.constant 0 : index
    %38 = vector.load %arg10[%c0_44, %c0_45] : memref<34x384xbf16, #tpu.memory_space<vmem>>, vector<34x128xbf16>
    tpu.vector_store %arg10[%c0_44, %c0_45], %37 {strides = array<i32>} : memref<34x384xbf16, #tpu.memory_space<vmem>>, vector<34x128xbf16>,
    %c1_46 = arith.constant 1 : index
    %c0_47 = arith.constant 0 : index
    %39 = vector.load %arg8[%c1_46, %c0_47] : memref<36x128xbf16, #tpu.memory_space<vmem>>, vector<34x128xbf16>
    %c0_48 = arith.constant 0 : index
    %c128_49 = arith.constant 128 : index
    %40 = vector.load %arg10[%c0_48, %c128_49] : memref<34x384xbf16, #tpu.memory_space<vmem>>, vector<34x128xbf16>
    tpu.vector_store %arg10[%c0_48, %c128_49], %39 {strides = array<i32>} : memref<34x384xbf16, #tpu.memory_space<vmem>>, vector<34x128xbf16>,
    %c2_50 = arith.constant 2 : index
    %c0_51 = arith.constant 0 : index
    %41 = vector.load %arg8[%c2_50, %c0_51] : memref<36x128xbf16, #tpu.memory_space<vmem>>, vector<34x128xbf16>
    %c0_52 = arith.constant 0 : index
    %c256_53 = arith.constant 256 : index
    %42 = vector.load %arg10[%c0_52, %c256_53] : memref<34x384xbf16, #tpu.memory_space<vmem>>, vector<34x128xbf16>
    tpu.vector_store %arg10[%c0_52, %c256_53], %41 {strides = array<i32>} : memref<34x384xbf16, #tpu.memory_space<vmem>>, vector<34x128xbf16>,
    %c0_54 = arith.constant 0 : index
    %c0_55 = arith.constant 0 : index
    %43 = vector.load %arg10[%c0_54, %c0_55] : memref<34x384xbf16, #tpu.memory_space<vmem>>, vector<34x384xbf16>
    %c0_56 = arith.constant 0 : index
    %c0_57 = arith.constant 0 : index
    %44 = vector.load %arg4[%c0_56, %c0_57] : memref<384x128xbf16, #tpu.memory_space<vmem>>, vector<384x128xbf16>
    %cst_58 = arith.constant dense<0.000000e+00> : vector<34x128xf32>
    %45 = tpu.matmul %43, %44, %cst_58 {dimension_numbers = #tpu.dot_dimension_numbers<[1], [0], [0], [1], [0, 0, 1, 1], [], []>} : vector<34x384xbf16>, vector<384x128xbf16>, vector<34x128xf32> -> vector<34x128xf32>
    %c0_59 = arith.constant 0 : index
    %c0_60 = arith.constant 0 : index
    %46 = vector.load %arg5[%c0_59, %c0_60] : memref<1x128xf32, #tpu.memory_space<vmem>>, vector<1x128xf32>
    %47 = vector.extract_strided_slice %45 {offsets = [0, 0], sizes = [16, 128], strides = [1, 1]} : vector<34x128xf32> to vector<16x128xf32>
    %48 = vector.broadcast %46 : vector<1x128xf32> to vector<16x128xf32>
    %49 = arith.addf %47, %48 : vector<16x128xf32>
    %c0_61 = arith.constant 0 : index
    %c0_62 = arith.constant 0 : index
    %c0_63 = arith.constant 0 : index
    %50 = vector.load %arg1[%c0_61, %c0_62, %c0_63] : memref<2x16x128xf32, #tpu.memory_space<vmem>>, vector<1x16x128xf32>
    %51 = vector.shape_cast %50 : vector<1x16x128xf32> to vector<16x128xf32>
    %52 = arith.addf %49, %51 : vector<16x128xf32>
    %cst_64 = arith.constant 0.000000e+00 : f32
    %53 = vector.broadcast %cst_64 : f32 to vector<16x128xf32>
    %54 = arith.maximumf %52, %53 : vector<16x128xf32>
    %c0_65 = arith.constant 0 : index
    %c0_66 = arith.constant 0 : index
    %c0_67 = arith.constant 0 : index
    %55 = vector.load %arg6[%c0_65, %c0_66, %c0_67] : memref<2x16x128xf32, #tpu.memory_space<vmem>>, vector<1x16x128xf32>
    %56 = vector.shape_cast %55 : vector<1x16x128xf32> to vector<16x128xf32>
    %57 = vector.shape_cast %54 : vector<16x128xf32> to vector<1x16x128xf32>
    tpu.vector_store %arg6[%c0_65, %c0_66, %c0_67], %57 {strides = array<i32>} : memref<2x16x128xf32, #tpu.memory_space<vmem>>, vector<1x16x128xf32>,
    %58 = vector.extract_strided_slice %45 {offsets = [18, 0], sizes = [16, 128], strides = [1, 1]} : vector<34x128xf32> to vector<16x128xf32>
    %59 = vector.broadcast %46 : vector<1x128xf32> to vector<16x128xf32>
    %60 = arith.addf %58, %59 : vector<16x128xf32>
    %c1_68 = arith.constant 1 : index
    %c0_69 = arith.constant 0 : index
    %c0_70 = arith.constant 0 : index
    %61 = vector.load %arg1[%c1_68, %c0_69, %c0_70] : memref<2x16x128xf32, #tpu.memory_space<vmem>>, vector<1x16x128xf32>
    %62 = vector.shape_cast %61 : vector<1x16x128xf32> to vector<16x128xf32>
    %63 = arith.addf %60, %62 : vector<16x128xf32>
    %cst_71 = arith.constant 0.000000e+00 : f32
    %64 = vector.broadcast %cst_71 : f32 to vector<16x128xf32>
    %65 = arith.maximumf %63, %64 : vector<16x128xf32>
    %c1_72 = arith.constant 1 : index
    %c0_73 = arith.constant 0 : index
    %c0_74 = arith.constant 0 : index
    %66 = vector.load %arg6[%c1_72, %c0_73, %c0_74] : memref<2x16x128xf32, #tpu.memory_space<vmem>>, vector<1x16x128xf32>
    %67 = vector.shape_cast %66 : vector<1x16x128xf32> to vector<16x128xf32>
    %68 = vector.shape_cast %65 : vector<16x128xf32> to vector<1x16x128xf32>
    tpu.vector_store %arg6[%c1_72, %c0_73, %c0_74], %68 {strides = array<i32>} : memref<2x16x128xf32, #tpu.memory_space<vmem>>, vector<1x16x128xf32>,
    return
  }
  func.func @transform_0(%arg0: i32) -> (i32, i32, i32) {
    %c0_i32 = arith.constant 0 : i32
    %c0_i32_0 = arith.constant 0 : i32
    %c0_i32_1 = arith.constant 0 : i32
    return %arg0, %c0_i32, %c0_i32_0 : i32, i32, i32
  }
  func.func @transform_1(%arg0: i32) -> (i32, i32) {
    %c0_i32 = arith.constant 0 : i32
    %c0_i32_0 = arith.constant 0 : i32
    %c0_i32_1 = arith.constant 0 : i32
    return %c0_i32, %c0_i32_0 : i32, i32
  }
  func.func @transform_2(%arg0: i32) -> (i32, i32) {
    %c0_i32 = arith.constant 0 : i32
    %c0_i32_0 = arith.constant 0 : i32
    %c0_i32_1 = arith.constant 0 : i32
    return %c0_i32, %c0_i32_0 : i32, i32
  }
  func.func @transform_3(%arg0: i32) -> (i32, i32) {
    %c0_i32 = arith.constant 0 : i32
    %c0_i32_0 = arith.constant 0 : i32
    %c0_i32_1 = arith.constant 0 : i32
    return %c0_i32, %c0_i32_0 : i32, i32
  }
  func.func @transform_4(%arg0: i32) -> (i32, i32) {
    %c0_i32 = arith.constant 0 : i32
    %c0_i32_0 = arith.constant 0 : i32
    %c0_i32_1 = arith.constant 0 : i32
    return %c0_i32, %c0_i32_0 : i32, i32
  }
  func.func @transform_5(%arg0: i32) -> (i32, i32, i32) {
    %c0_i32 = arith.constant 0 : i32
    %c0_i32_0 = arith.constant 0 : i32
    %c0_i32_1 = arith.constant 0 : i32
    return %arg0, %c0_i32, %c0_i32_0 : i32, i32, i32
  }
}

</mosaic_0001>

<bundles_post_ra>
// kernel: tpu_custom_call.1
= control target key start
LH: loop header
LB: loop body
LE: loop exit
PB: predicated region body
PF: predicated region fallthrough
CT: control target
= control target key end

     0   :  { %10 = vsyncpa [#allocation7], 0  ;;  %s2424_s0 = inlined_call_operand.hbm [shape: f32[4,16,128], index: 0, kind: input, shape index: {}]   ;;  %s2425_s1 = inlined_call_operand.hbm [shape: bf16[384,128], index: 1, kind: input, shape index: {}]   ;;  %s2426_s2 = inlined_call_operand.vmem [shape: f32[1,128], index: 2, kind: input, shape index: {}]   ;;  %s2427_s3 = inlined_call_operand.hbm [shape: bf16[384,128], index: 3, kind: input, shape index: {}]   ;;  %s2428_s4 = inlined_call_operand.vmem [shape: f32[1,128], index: 4, kind: input, shape index: {}]   ;;  %s2429_s5 = inlined_call_operand.hbm [shape: f32[4,16,128], index: 5, kind: output, shape index: {}]  }
   0x1   :  { %12 = vsyncpa [#allocation7 + $0x1], 0 }
   0x2   :  { %13 = vsyncpa [#allocation10], 0 }
   0x3   :  { %14 = vsyncpa [#allocation8], 0 }
   0x4   :  { %16 = vsyncpa [#allocation8 + $0x1], 0  ;;  %s2088_s18 = smov 0   ;;  %s2090_s19 = smov 0  }
   0x5   :  { %s2092_s20 = smov 0   ;;  %s2094_s21 = smov 0  }
   0x6 LB: > { %s2109_s22 = sadd.s32 4294967295, %s2048_s21   ;;  %s1464_s23 = sadd.s32 4294967294, %s2048_s21   ;;  %s2048_s21 = sphi %s2094_s21, %s2463_s21   ;;  %s2044_s20 = sphi %s2092_s20, %s2462_s20   ;;  %s2040_s19 = sphi %s2090_s19, %s2461_s19   ;;  %s2036_s18 = sphi %s2088_s18, %s2460_s18  }
   0x7   : > { %p42_p0 = scmp.ne.s32.totalorder %s2040_s19, %s2036_s18  ;;  %p43_p1 = scmp.eq.s32.totalorder %s2109_s22, 0 }
   0x8   : > { %p150_p2 = scmp.eq.s32.totalorder %s2109_s22, 1  ;;  %p156_p3 = scmp.eq.s32.totalorder %s1464_s23, 1 }
   0x9   : > { %p2118_p4 = por %p43_p1, %p42_p0  ;;  %p1465_p5 = scmp.ge.s32.totalorder %s2048_s21, 1 }
   0xa   : > { %p2123_p6 = por %p156_p3, %p42_p0  ;;  %p163_p7 = scmp.lt.s32.totalorder %s2048_s21, 3 }
   0xb   : > { %s174_s28 = sshll.u32 %s2425_s1, 4  ;;  %s2050_s30 = smov [#allocation9]   ;;  %s175_s28 = int_to_ptr.hbm [resolvable:$true] %s174_s28 }
   0xc   : > { %p2131_p8 = pnand %p1465_p5, %p163_p7  ;;  %s176_s6 = sshll.u32 %s2050_s30, 4  ;;  %s177_s6 = int_to_ptr.vmem [resolvable:$true] %s176_s6 }
   0xd   : > { %s191_s9 = sshll.u32 %s2427_s3, 4  ;;  %s2051_s10 = smov 64   ;;  %s192_s9 = int_to_ptr.hbm [resolvable:$true] %s191_s9 }
   0xe   : > { %p1825_p9 = pneg %p2131_p8  ;;  %s2052_s11 = smov 4  }
   0xf   : > { %s2053_s12 = smov [#allocation11]   ;;  %s2144_s14 = sadd.s32 1, %s2048_s21  }
  0x10   : > { %p1826_p10 = pnand %p1825_p9, %p43_p1  ;;  %s193_s13 = sshll.u32 %s2053_s12, 4  ;;  %s194_s13 = int_to_ptr.vmem [resolvable:$true] %s193_s13 }
  0x11   : > { %s29_s15 = sadd.s32 1, %s2044_s20  ;;  %s26_s16 = ssub.s32 %s2048_s21, %s2144_s14 }
  0x12   : > { %1828 = dma.hbm_to_vmem [thread:$0]  (!%p1826_p10), %s175_s28, 3072, %s177_s6, [#allocation10], %s2051_s10, %s2051_s10, %s2052_s11  }
  0x13   : > { %1831 = dma.hbm_to_vmem [thread:$0]  (!%p1826_p10), %s192_s9, 3072, %s194_s13, [#allocation10], %s2051_s10, %s2051_s10, %s2052_s11  }
  0x14   : > { %p36_p12 = scmp.ne.s32.totalorder %s2044_s20, %s2040_s19  ;;  %p27_p13 = scmp.eq.s32.totalorder %s26_s16, 0 }
  0x15   : > { %p37_p0 = scmp.eq.s32.totalorder %s2048_s21, 0  ;;  %p1842_p5 = scmp.lt.s32.totalorder %s2048_s21, 2 }
  0x16   : > { %p2154_p3 = por %p150_p2, %p36_p12  ;;  %s210_s26 = sand.u32 1, %s2044_s20  }
  0x17   : > { %s2160_s23 = scalar_select %p27_p13, %s2044_s20, %s29_s15  }
  0x18   : > { %p38_p7 = por %p37_p0, %p36_p12  ;;  %s1469_s27 = sshll.u32 %s210_s26, 5 }
  0x19   : > { %s1734_s28 = sshll.u32 %s2048_s21, 5  ;;  %s214_s8 = scalar_lea.vmem [#allocation6], %s1469_s27 }
  0x1a   : > { %s220_s7 = scalar_lea.hbm %s2424_s0, %s1734_s28  ;;  %s223_s9 = sshll.u32 %s214_s8, 4  ;;  %s224_s9 = int_to_ptr.vmem [resolvable:$true] %s223_s9 }
  0x1b   : > { %s221_s10 = sshll.u32 %s220_s7, 4  ;;  %p2167_p2 = pnand %p1842_p5, %p38_p7  ;;  %s222_s10 = int_to_ptr.hbm [resolvable:$true] %s221_s10 }
  0x1c   : > { %s211_s12 = scalar_lea.sflag [#allocation7], %s210_s26  ;;  %s1948_s13 = sshra.s32 %s222_s10, 4  ;;  %s1949_s13 = int_to_ptr.hbm [resolvable:$true] %s1948_s13 }
  0x1d   : > { %s1950_s15 = scalar_lea.hbm %s1949_s13, 32  ;;  %p1952_p10 = pneg %p2167_p2 }
  0x1e   : > { %p1951_p9 = scmp.ne.s32.totalorder %s1949_s13, %s1950_s15  ;;  %s1955_s28 = scalar_lea.hbm %s2424_s0, 64 }
  0x1f   : > { %p1956_p0 = scmp.lt.s32.totalorder %s1949_s13, %s2424_s0  ;;  %p1957_p5 = scmp.lt.s32.totalorder %s1955_s28, %s1950_s15 }
  0x20   : > { %p1953_p12 = pnand %p1952_p10, %p1951_p9 }
  0x21   : > { %p1958_p7 = por %p1957_p5, %p1956_p0 }
  0x22   : > { %p1954_p13 = pneg %p1953_p12 }
  0x24   : > { %p1959_p11 = pnand %p1958_p7, %p1954_p13 }
  0x26   : > { %1962 = shalt.err (!%p1959_p11)
}
  0x27   : > { %s2054_s26 = smov 128   ;;  %s2055_s7 = smov 8  }
  0x28   : > { %1835 = dma.hbm_to_vmem [thread:$0]  (!%p2167_p2), %s222_s10, 512, %s224_s9, %s211_s12, %s2054_s26, %s2054_s26, %s2055_s7  }
  0x29   : > { %235 = sbr.rel (%p2131_p8) target bundleno = 477 (0x1dd), region = 40  ;;  %s2184_s8 = sand.u32 (!%p2131_p8), 1, %s2040_s19  }
  0x2a   : > { %s1474_s13 = sshll.u32 (!%p2131_p8), %s2184_s8, 5  ;;  %s238_s15 = scalar_lea.sflag (!%p2131_p8), [#allocation7], %s2184_s8 }
  0x2b   : > { %s2190_s16 = scalar_lea.vmem (!%p2131_p8), [#allocation6], %s1474_s13 }
  0x2e   : > { %2023 = dma.done.wait (%p2118_p4), %s238_s15, 512  }
  0x2f   : > { %2025 = vsyncadd (%p2118_p4), %s238_s15, 4294966784 }
  0x30   : > { %2027 = dma.done.wait (%p43_p1), [#allocation10], 6144  }
  0x31   : > { %2029 = vsyncadd (%p43_p1), [#allocation10], 4294961152  ;;  %v1748_v0 = vld [vmem:[#allocation9 + $0x38] sm:$0xff]  ;;  %vm282_vm0 = vcmask 1040384   ;;  %vm283_vm1 = vsmask.f32 256 }
  0x32   : > { %v1756_v1 = vld [vmem:[#allocation9 + $0x78] sm:$0xff]  ;;  %1797 = vmatpush.bf16.msra.mxu2 %v1748_v0  ;;  %v1747_v2 = vld [vmem:[#allocation9 + $0x30] sm:$0xff]  ;;  %754 = vmatpush.bf16.msra.mxu0 %v1748_v0  ;;  %vm334_vm2 = vcmask 1041409   ;;  %vm335_vm3 = vsmask.f32 1280  ;;  %vm2208_vm5 = vmand %vm282_vm0, %vm283_vm1  ;;  %vm2430_vm6 = vcmask 1041408  }
  0x33   : > { %1805 = vmatpush.bf16.msra.mxu3 %v1756_v1  ;;  %v1755_v3 = vld [vmem:[#allocation9 + $0x70] sm:$0xff]  ;;  %777 = vmatpush.bf16.msra.mxu1 %v1756_v1  ;;  %vm2202_vm4 = vmand %vm334_vm2, %vm335_vm3  ;;  %v337_v6 = vld [vmem:[#allocation2 + $0x8] sm:$0x2]  ;;  %vm292_vm7 = vsmask.f32 4368  ;;  %vm314_vm9 = vcmask 1043456  }
  0x34   : > { %v1746_v7 = vld [vmem:[#allocation9 + $0x28] sm:$0xff]  ;;  %v338_v8 = vsel %vm2202_vm4, 0, %v337_v6  ;;  %v1479_v9 = vld [vmem:[%s2190_s16 + $0x18] sm:$0xff]  ;;  %v285_v10 = vld [vmem:[#allocation2] sm:$0x1]  ;;  %vm369_vm11 = vcmask 1043457  }
  0x35   : > { %v1754_v11 = vld [vmem:[#allocation9 + $0x68] sm:$0xff]  ;;  %v344_v12 = vpack.c.bf16 %v1479_v9, %v1479_v9  ;;  %339 = vst [vmem:[#allocation2 + $0x8] sm:$0x2] %v338_v8  ;;  %v286_v13 = vsel %vm2208_vm5, 0, %v285_v10  ;;  %v2218_v14 = vld [vmem:[%s2190_s16] sm:$0xff]  ;;  %v2228_v23 = vld [vmem:[%s2190_s16 + $0x10] sm:$0xff] }
  0x36   : > { %1798 = vmatpush.bf16.msra.mxu2 %v1747_v2  ;;  %755 = vmatpush.bf16.msra.mxu0 %v1747_v2  ;;  %287 = vst [vmem:[#allocation2] sm:$0x1] %v286_v13  ;;  %v2221_v15 = vld [vmem:[%s2190_s16 + $0x8] sm:$0xff]  ;;  %v290_v16 = vpack.c.bf16 %v2218_v14, %v2218_v14  ;;  %v1745_v17 = vld [vmem:[#allocation9 + $0x20] sm:$0xff]  ;;  %vm315_vm8 = vsmask.f32 7938  ;;  %vm2232_vm10 = vmand %vm2430_vm6, %vm335_vm3  ;;  %v343_v31 = vpack.c.bf16 %v2228_v23, %v2228_v23 }
  0x37   : > { %1806 = vmatpush.bf16.msra.mxu3 %v1755_v3  ;;  %778 = vmatpush.bf16.msra.mxu1 %v1755_v3  ;;  %v357_v18 = vshrl.u32 %v344_v12, 16  ;;  %v360_v19 = vshll.u32 %v344_v12, 16  ;;  %v291_v20 = vpack.c.bf16 %v2221_v15, %v2221_v15  ;;  %v1753_v24 = vld [vmem:[#allocation9 + $0x60] sm:$0xff]  ;;  %v378_v33 = vld [vmem:[#allocation2 + $0x10] sm:$0x3]  ;;  %vm2242_vm12 = vmand %vm314_vm9, %vm315_vm8  ;;  %s2379_s11 = scalar_lea.vmem [#allocation12], %s1474_s13 }
  0x38   : > { %v295_v21 = vshrl.u32 %v290_v16, 16  ;;  %v298_v22 = vshll.u32 %v290_v16, 16  ;;  %v1744_v36 = vld [vmem:[#allocation9 + $0x18] sm:$0xff]  ;;  %vm2248_vm13 = vmor %vm283_vm1, %vm292_vm7  ;;  %v321_v40 = vld [vmem:[#allocation2 + $0x8] sm:$0x1]  ;;  %v348_v41 = vshrl.u32 %v343_v31, 16 }
  0x39   : > { %v359_v25 = vrot.slane %v357_v18, 6  ;;  %v362_v26 = vrot.slane %v360_v19, 7  ;;  %v303_v27 = vshrl.u32 %v291_v20, 16  ;;  %v306_v28 = vshll.u32 %v291_v20, 16  ;;  %v1752_v43 = vld [vmem:[#allocation9 + $0x58] sm:$0xff]  ;;  %v1743_v56 = vld [vmem:[#allocation9 + $0x10] sm:$0xff] }
  0x3a   : > { %1799 = vmatpush.bf16.msra.mxu2 %v1746_v7  ;;  %756 = vmatpush.bf16.msra.mxu0 %v1746_v7  ;;  %v297_v30 = vrot.slane %v295_v21, 7  ;;  %v351_v42 = vshll.u32 %v343_v31, 16  ;;  %vm370_vm14 = vsmask.f32 7942  ;;  %v350_v49 = vrot.slane %v348_v41, 6  ;;  %v1751_v58 = vld [vmem:[#allocation9 + $0x50] sm:$0xff] }
  0x3b   : > { %1807 = vmatpush.bf16.msra.mxu3 %v1754_v11  ;;  %779 = vmatpush.bf16.msra.mxu1 %v1754_v11  ;;  %v2238_v32 = vor.u32 %v362_v26, %v359_v25  ;;  %v305_v34 = vrot.slane %v303_v27, 7  ;;  %vm2257_vm15 = vmand %vm369_vm11, %vm370_vm14  ;;  %v1742_v60 = vld [vmem:[#allocation9 + $0x8] sm:$0xff]  ;;  %vm345_vm1 = vsmask.f32 5392  ;;  %vm406_vm9 = vsmask.f32 3328 }
  0x3c   : > { %v300_v38 = vor.u32 %v298_v22, %v297_v30  ;;  %v301_v39 = vrot.slane %v297_v30, 4  ;;  %v353_v50 = vrot.slane %v351_v42, 7  ;;  %v372_v55 = vld [vmem:[#allocation2 + $0x8] sm:$0xe]  ;;  %vm2271_vm7 = vmand %vm334_vm2, %vm370_vm14  ;;  %v1741_v0 = vld [vmem:[#allocation9] sm:$0xff]  ;;  %s1796_s12 = sshll.u32 %s2109_s22, 5 }
  0x3d   : > { %v365_v44 = vrot.slane %v2238_v32, 4  ;;  %v308_v45 = vor.u32 %v306_v28, %v305_v34  ;;  %v310_v46 = vrot.slane %v305_v34, 4  ;;  %v317_v47 = vld [vmem:[#allocation2] sm:$0xf]  ;;  %v1750_v61 = vld [vmem:[#allocation9 + $0x48] sm:$0xff]  ;;  %vm2276_vm6 = vmor %vm335_vm3, %vm345_vm1  ;;  %vm479_vm3 = vcmask 1046532   ;;  %s1368_s30 = scalar_lea.hbm %s2429_s5, %s1796_s12 }
  0x3e   : > { %1800 = vmatpush.bf16.msra.mxu2 %v1745_v17  ;;  %757 = vmatpush.bf16.msra.mxu0 %v1745_v17  ;;  %v318_v48 = vsel %vm2242_vm12, %v300_v38, %v317_v47  ;;  %v354_v57 = vor.u32 %v353_v50, %v350_v49  ;;  %vm407_vm11 = vsmask.f32 7440  ;;  %v1764_v6 = vld [vmem:[#allocation9 + $0xb8] sm:$0xff]  ;;  %v1749_v7 = vld [vmem:[#allocation9 + $0x40] sm:$0xff]  ;;  %vm2282_vm2 = vmand %vm282_vm0, %vm315_vm8  ;;  %vm478_vm0 = vcmask 1042432   ;;  %s1369_s6 = sshll.u32 %s2379_s11, 4  ;;  %s1370_s6 = int_to_ptr.vmem [resolvable:$true] %s1369_s6 }
  0x3f   : > { %1808 = vmatpush.bf16.msra.mxu3 %v1753_v24  ;;  %780 = vmatpush.bf16.msra.mxu1 %v1753_v24  ;;  %v379_v52 = vsel %vm2232_vm10, %v365_v44, %v378_v33  ;;  %v309_v53 = vsel %vm2248_vm13, %v301_v39, %v308_v45  ;;  %319 = vst [vmem:[#allocation2] sm:$0xf] %v318_v48  ;;  %v1763_v30 = vld [vmem:[#allocation9 + $0xb0] sm:$0xff]  ;;  %vm2299_vm8 = vmor %vm406_vm9, %vm407_vm11  ;;  %v1762_v44 = vld [vmem:[#allocation9 + $0xa8] sm:$0xff]  ;;  %s1371_s26 = sshll.u32 %s1368_s30, 4  ;;  %s1356_s22 = scalar_lea.sflag [#allocation8], %s2184_s8  ;;  %s1372_s26 = int_to_ptr.hbm [resolvable:$true] %s1371_s26 }
  0x40   : > { %v322_v54 = vsel %vm2208_vm5, %v310_v46, %v321_v40  ;;  %380 = vst [vmem:[#allocation2 + $0x10] sm:$0x3] %v379_v52  ;;  %v373_v59 = vsel %vm2257_vm15, %v354_v57, %v372_v55  ;;  %v355_v63 = vrot.slane %v354_v57, 4  ;;  %v1785_v4 = vld [vmem:[#allocation11 + $0x70] sm:$0xff]  ;;  %v1788_v62 = vld [vmem:[#allocation11 + $0x88] sm:$0xff]  ;;  %s1992_s7 = sshra.s32 %s1372_s26, 4  ;;  %s1993_s7 = int_to_ptr.hbm [resolvable:$true] %s1992_s7 }
  0x41   : > { %320 = vst [vmem:[#allocation2 + $0x4] sm:$0xf] %v309_v53  ;;  %s1994_s13 = scalar_lea.hbm %s1993_s7, 32  ;;  %s1998_s24 = scalar_lea.hbm %s2429_s5, 64 }
  0x42   : > { %1801 = vmatpush.bf16.msra.mxu2 %v1744_v36  ;;  %758 = vmatpush.bf16.msra.mxu0 %v1744_v36  ;;  %323 = vst [vmem:[#allocation2 + $0x8] sm:$0x1] %v322_v54  ;;  %v364_v18 = vsel %vm2276_vm6, %v355_v63, %v2238_v32  ;;  %vm2293_vm6 = vmor %vm478_vm0, %vm479_vm3  ;;  %p1995_p1 = scmp.ne.s32.totalorder %s1993_s7, %s1994_s13  ;;  %p1999_p11 = scmp.lt.s32.totalorder %s1993_s7, %s2429_s5 }
  0x43   : > { %1809 = vmatpush.bf16.msra.mxu3 %v1752_v43  ;;  %781 = vmatpush.bf16.msra.mxu1 %v1752_v43  ;;  %374 = vst [vmem:[#allocation2 + $0x8] sm:$0xe] %v373_v59  ;;  %p2000_p2 = scmp.lt.s32.totalorder %s1998_s24, %s1994_s13 }
  0x44   : > { %375 = vst [vmem:[#allocation2 + $0xc] sm:$0xf] %v364_v18  ;;  %p1996_p4 = pnand %p1995_p1, %p2154_p3 }
  0x45   : > { %p2001_p9 = por %p2000_p2, %p1999_p11 }
  0x46   : > { %1802 = vmatpush.bf16.msra.mxu2 %v1743_v56  ;;  %759 = vmatpush.bf16.msra.mxu0 %v1743_v56  ;;  %v391_v1 = vld [vmem:[#allocation2] sm:$0xf]  ;;  %p1997_p8 = pneg %p1996_p4 }
  0x47   : > { %1810 = vmatpush.bf16.msra.mxu3 %v1751_v58  ;;  %782 = vmatpush.bf16.msra.mxu1 %v1751_v58  ;;  %v401_v2 = vld [vmem:[#allocation2] sm:$0xf]  ;;  %v382_v8 = vld [vmem:[#allocation2 + $0x10] sm:$0x2]  ;;  %v395_v9 = vld [vmem:[#allocation2 + $0x10] sm:$0x1] }
  0x48   : > { %396 = vst [vmem:[#allocation4] sm:$0xf] %v391_v1  ;;  %v383_v11 = vsel %vm2271_vm7, 0, %v382_v8  ;;  %v392_v12 = vld [vmem:[#allocation2 + $0x4] sm:$0xf]  ;;  %v410_v13 = vshrl.u32 %v401_v2, 16  ;;  %p2002_p10 = pnand %p2001_p9, %p1997_p8 }
  0x49   : > { %400 = vst [vmem:[#allocation4 + $0x30] sm:$0x1] %v395_v9  ;;  %v325_v16 = vld [vmem:[#allocation2 + $0x8] sm:$0x1]  ;;  %v402_v17 = vld [vmem:[#allocation2 + $0x4] sm:$0xf] }
  0x4a   : > { %1803 = vmatpush.bf16.msra.mxu2 %v1742_v60  ;;  %760 = vmatpush.bf16.msra.mxu0 %v1742_v60  ;;  %384 = vst [vmem:[#allocation2 + $0x10] sm:$0x2] %v383_v11  ;;  %v326_v19 = vsel %vm2282_vm2, 0, %v325_v16  ;;  %v412_v20 = vrot.slane %v410_v13, 4  ;;  %v413_v21 = vshll.u32 %v401_v2, 16  ;;  %v419_v22 = vshll.u32 %v402_v17, 16 }
  0x4b   : > { %1811 = vmatpush.bf16.msra.mxu3 %v1750_v61  ;;  %783 = vmatpush.bf16.msra.mxu1 %v1750_v61  ;;  %397 = vst [vmem:[#allocation4 + $0xc] sm:$0xf] %v392_v12  ;;  %v423_v24 = vshrl.u32 %v402_v17, 16  ;;  %v468_v25 = vld [vmem:[#allocation2] sm:$0xe] }
  0x4c   : > { %327 = vst [vmem:[#allocation2 + $0x8] sm:$0x1] %v326_v19  ;;  %v415_v26 = vrot.slane %v413_v21, 5  ;;  %v421_v27 = vrot.slane %v419_v22, 5  ;;  %v469_v28 = vld [vmem:[#allocation2 + $0x4] sm:$0xf] }
  0x4d   : > { %v425_v31 = vrot.slane %v423_v24, 4  ;;  %v1480_v33 = vrot.slane %v468_v25, 9  ;;  %v483_v34 = vrot.slane %v469_v28, 5  ;;  %v404_v60 = vld [vmem:[#allocation2 + $0xc] sm:$0xf]  ;;  %v1761_v61 = vld [vmem:[#allocation9 + $0xa0] sm:$0xff] }
  0x4e   : > { %1804 = vmatpush.bf16.msra.mxu2 %v1741_v0  ;;  %761 = vmatpush.bf16.msra.mxu0 %v1741_v0  ;;  %v416_v36 = vor.u32 %v415_v26, %v412_v20  ;;  %v471_v8 = vld [vmem:[#allocation2 + $0xc] sm:$0xf]  ;;  %v1760_v20 = vld [vmem:[#allocation9 + $0x98] sm:$0xff] }
  0x4f   : > { %1812 = vmatpush.bf16.msra.mxu3 %v1749_v7  ;;  %784 = vmatpush.bf16.msra.mxu1 %v1749_v7  ;;  %v1483_v38 = vld [vmem:[#allocation4] sm:$0xf]  ;;  %v426_v40 = vor.u32 %v425_v31, %v421_v27  ;;  %v484_v41 = vsel %vm2293_vm6, %v1480_v33, %v483_v34  ;;  %v485_v54 = vrot.slane %v483_v34, 4  ;;  %v443_v7 = vshrl.u32 %v404_v60, 16  ;;  %v394_v12 = vld [vmem:[#allocation2 + $0xc] sm:$0xf] }
  0x50   : > { %v417_v43 = vrot.slane %v416_v36, 4  ;;  %500 = vst [vmem:[#allocation4 + $0x8] sm:$0xf] %v484_v41  ;;  %v489_v22 = vrot.slane %v471_v8, 5  ;;  %v1759_v31 = vld [vmem:[#allocation9 + $0x90] sm:$0xff] }
  0x51   : > { %v405_v42 = vld [vmem:[#allocation2 + $0x10] sm:$0x3]  ;;  %v427_v52 = vrot.slane %v426_v40, 4  ;;  %v445_v18 = vrot.slane %v443_v7, 4  ;;  %399 = vst [vmem:[#allocation4 + $0x24] sm:$0xf] %v394_v12 }
  0x52   : > { %800 = vmatpush.bf16.msrb.mxu2 %v1764_v6  ;;  %v449_v45 = vshll.u32 %v405_v42, 16  ;;  %v453_v46 = vshrl.u32 %v405_v42, 16  ;;  %v1736_v47 = vld [vmem:[#allocation4 + $0x8] sm:$0xf0]  ;;  %v422_v50 = vsel %vm2299_vm8, %v417_v43, %v421_v27  ;;  %v439_v6 = vshll.u32 %v404_v60, 16 }
  0x53   : > { %v1484_v48 = vor.u32 %v1736_v47, %v1483_v38  ;;  %v403_v49 = vld [vmem:[#allocation2 + $0x8] sm:$0xf]  ;;  %463 = vst [vmem:[#allocation4 + $0x4] sm:$0xf] %v422_v50  ;;  %v472_v19 = vld [vmem:[#allocation2 + $0x10] sm:$0x3] }
  0x54   : > { %v470_v53 = vld [vmem:[#allocation2 + $0x8] sm:$0xf]  ;;  %v451_v55 = vrot.slane %v449_v45, 5  ;;  %v455_v56 = vrot.slane %v453_v46, 4  ;;  %v429_v57 = vshll.u32 %v403_v49, 16  ;;  %v433_v58 = vshrl.u32 %v403_v49, 16 }
  0x55   : > { %762 = vmatmul.bf16.vlgmr.msra.gmra.mxu0 %v1484_v48  ;;  %v486_v59 = vrot.slane %v470_v53, 5  ;;  %v393_v1 = vld [vmem:[#allocation2 + $0x8] sm:$0xf]  ;;  %v441_v17 = vrot.slane %v439_v6, 5  ;;  %v492_v24 = vrot.slane %v472_v19, 5  ;;  %v491_v28 = vrot.slane %v489_v22, 4 }
  0x56   : > { %801 = vmatpush.bf16.msrb.mxu2 %v1763_v30  ;;  %v456_v63 = vor.u32 %v455_v56, %v451_v55  ;;  %v431_v0 = vrot.slane %v429_v57, 5  ;;  %v435_v2 = vrot.slane %v433_v58, 4  ;;  %398 = vst [vmem:[#allocation4 + $0x18] sm:$0xf] %v393_v1  ;;  %v1758_v46 = vld [vmem:[#allocation9 + $0x88] sm:$0xff]  ;;  %v1778_v6 = vld [vmem:[#allocation11 + $0x38] sm:$0xff] }
  0x57   : > { %v487_v3 = vsel %vm2293_vm6, %v485_v54, %v486_v59  ;;  %v488_v16 = vrot.slane %v486_v59, 4  ;;  %v446_v25 = vor.u32 %v445_v18, %v441_v17  ;;  %v493_v34 = vsel %vm2293_vm6, %v491_v28, %v492_v24  ;;  %1248 = vmatpush.bf16.msrb.mxu3 %v1778_v6  ;;  %v331_v7 = vld [vmem:[#allocation3 + $0x8] sm:$0x1]  ;;  %v385_v18 = vld [vmem:[#allocation3 + $0x8] sm:$0x2]  ;;  %v1775_v19 = vld [vmem:[#allocation11 + $0x20] sm:$0xff] }
  0x58   : > { %v457_v9 = vrot.slane %v456_v63, 4  ;;  %v432_v11 = vsel %vm2299_vm8, %v427_v52, %v431_v0  ;;  %501 = vst [vmem:[#allocation4 + $0x14] sm:$0xf] %v487_v3  ;;  %v436_v13 = vor.u32 %v435_v2, %v431_v0  ;;  %v1739_v45 = vld [vmem:[#allocation4 + $0x20] sm:$0xf0]  ;;  %v494_v50 = vrot.slane %v492_v24, 4 }
  0x59   : > { %464 = vst [vmem:[#allocation4 + $0x10] sm:$0xf] %v432_v11  ;;  %v490_v27 = vsel %vm2293_vm6, %v488_v16, %v489_v22  ;;  %v447_v30 = vrot.slane %v446_v25, 4  ;;  %v1757_v52 = vld [vmem:[#allocation9 + $0x80] sm:$0xff]  ;;  %v328_v2 = vld [vmem:[#allocation3] sm:$0x1] }
  0x5a   : > { %802 = vmatpush.bf16.msrb.mxu2 %v1762_v44  ;;  %467 = vst [vmem:[#allocation4 + $0x34] sm:$0x1] %v457_v9  ;;  %v437_v21 = vrot.slane %v436_v13, 4  ;;  %v1735_v33 = vld [vmem:[#allocation4 + $0x4] sm:$0xf]  ;;  %v329_v3 = vsel %vm2208_vm5, 0, %v328_v2 }
  0x5b   : > { %502 = vst [vmem:[#allocation4 + $0x20] sm:$0xf] %v490_v27  ;;  %v452_v36 = vsel %vm2299_vm8, %v447_v30, %v451_v55  ;;  %v1491_v55 = vld [vmem:[#allocation4 + $0x8] sm:$0xf]  ;;  %v332_v8 = vsel %vm2282_vm2, 0, %v331_v7  ;;  %v1776_v13 = vld [vmem:[#allocation11 + $0x28] sm:$0xff] }
  0x5c   : > { %v442_v26 = vsel %vm2299_vm8, %v437_v21, %v441_v17  ;;  %503 = vst [vmem:[#allocation4 + $0x2c] sm:$0xf] %v493_v34  ;;  %v1777_v9 = vld [vmem:[#allocation11 + $0x30] sm:$0xff]  ;;  %v1794_v17 = vld [vmem:[#allocation11 + $0xb8] sm:$0xff]  ;;  %v2332_v22 = vld [vmem:[%s2426_s2] ss:$0 sm:$0xff] }
  0x5d   : > { %465 = vst [vmem:[#allocation4 + $0x1c] sm:$0xf] %v442_v26  ;;  %v1495_v40 = vld [vmem:[#allocation4 + $0x18] sm:$0xf]  ;;  %1249 = vmatpush.bf16.msrb.mxu3 %v1777_v9  ;;  %1294 = vmatpush.bf16.msrb.mxu1 %v1794_v17  ;;  %v1786_v21 = vld [vmem:[#allocation11 + $0x78] sm:$0xff]  ;;  %v1793_v24 = vld [vmem:[#allocation11 + $0xb0] sm:$0xff] }
  0x5e   : > { %803 = vmatpush.bf16.msrb.mxu2 %v1761_v61  ;;  %466 = vst [vmem:[#allocation4 + $0x28] sm:$0xf] %v452_v36  ;;  %v1496_v47 = vor.u32 %v1739_v45, %v1495_v40  ;;  %1271 = vmatpush.bf16.msrb.mxu0 %v1786_v21  ;;  %v1774_v26 = vld [vmem:[#allocation11 + $0x18] sm:$0xff]  ;;  %v1784_v36 = vld [vmem:[#allocation11 + $0x68] sm:$0xff]  ;;  %v1781_v2 = vld [vmem:[#allocation11 + $0x50] sm:$0xff] }
  0x5f   : > { %504 = vst [vmem:[#allocation4 + $0x38] sm:$0x1] %v494_v50  ;;  %v1737_v56 = vld [vmem:[#allocation4 + $0x10] sm:$0xf0] }
  0x60   : > { %v1485_v38 = vld [vmem:[#allocation4 + $0xc] sm:$0xf0]  ;;  %v1492_v58 = vor.u32 %v1737_v56, %v1491_v55  ;;  %330 = vst [vmem:[#allocation3] sm:$0x1] %v329_v3 }
  0x61   : > { %v513_v41 = vld [vmem:[#allocation4 + $0x30] sm:$0x11]  ;;  %v1488_v42 = vor.u32 %v1735_v33, %v1485_v38  ;;  %333 = vst [vmem:[#allocation3 + $0x8] sm:$0x1] %v332_v8  ;;  %1250 = vmatpush.bf16.msrb.mxu3 %v1776_v13  ;;  %1295 = vmatpush.bf16.msrb.mxu1 %v1793_v24  ;;  %v1773_v33 = vld [vmem:[#allocation11 + $0x10] sm:$0xff]  ;;  %v1791_v38 = vld [vmem:[#allocation11 + $0xa0] sm:$0xff] }
  0x62   : > { %804 = vmatpush.bf16.msrb.mxu2 %v1760_v20  ;;  %v589_v43 = vunpack.c.l.b16 %v513_v41  ;;  %v590_v44 = vunpack.c.h.b16 %v513_v41  ;;  %v1503_v59 = vld [vmem:[#allocation4 + $0x20] sm:$0xf]  ;;  %v386_v20 = vsel %vm2202_vm4, 0, %v385_v18  ;;  %1272 = vmatpush.bf16.msrb.mxu0 %v1785_v4  ;;  %v1787_v18 = vld [vmem:[#allocation11 + $0x80] sm:$0xff]  ;;  %vm2458_vm4 = vcmask 1041408  }
  0x63   : > { %785 = vmatmul.bf16.vlgmr.msra.gmra.mxu1 %v1488_v42  ;;  %v1740_v60 = vld [vmem:[#allocation4 + $0x28] sm:$0xf0]  ;;  %387 = vst [vmem:[#allocation3 + $0x8] sm:$0x2] %v386_v20  ;;  %v1772_v42 = vld [vmem:[#allocation11 + $0x8] sm:$0xff]  ;;  %v1779_v20 = vld [vmem:[#allocation11 + $0x40] sm:$0xff] }
  0x64   : > { %v598_v48 = vpack.c.b16 %v589_v43, %v589_v43  ;;  %v599_v49 = vpack.c.b16 %v590_v44, %v590_v44  ;;  %v1738_v53 = vld [vmem:[#allocation4 + $0x1c] sm:$0xf]  ;;  %v1504_v61 = vor.u32 %v1740_v60, %v1503_v59  ;;  %v1780_v13 = vld [vmem:[#allocation11 + $0x48] sm:$0xff] }
  0x65   : > { %767 = vmatmul.bf16.gmra.mxu0 %v1496_v47  ;;  %v1497_v54 = vld [vmem:[#allocation4 + $0x24] sm:$0xf0]  ;;  %1251 = vmatpush.bf16.msrb.mxu3 %v1775_v19  ;;  %v1783_v44 = vld [vmem:[#allocation11 + $0x60] sm:$0xff]  ;;  %v1790_v47 = vld [vmem:[#allocation11 + $0x98] sm:$0xff] }
  0x66   : > { %805 = vmatpush.bf16.msrb.mxu2 %v1759_v31  ;;  %795 = vmatmul.bf16.vlgmr.msra.gmra.mxu3 %v599_v49  ;;  %v1500_v57 = vor.u32 %v1738_v53, %v1497_v54  ;;  %v514_v63 = vld [vmem:[#allocation4 + $0x38] sm:$0x1]  ;;  %v1792_v31 = vld [vmem:[#allocation11 + $0xa8] sm:$0xff]  ;;  %v1782_v53 = vld [vmem:[#allocation11 + $0x58] sm:$0xff] }
  0x67   : > { %772 = vmatmul.bf16.vlgmr.msra.gmra.mxu2 %v598_v48  ;;  %v591_v0 = vunpack.c.l.b16 %v514_v63  ;;  %1296 = vmatpush.bf16.msrb.mxu1 %v1792_v31  ;;  %v1771_v48 = vld [vmem:[#allocation11] sm:$0xff] }
  0x68   : > { %1273 = vmatpush.bf16.msrb.mxu0 %v1784_v36 }
  0x69   : > { %v600_v1 = vpack.c.b16 %v591_v0, %v591_v0  ;;  %1252 = vmatpush.bf16.msrb.mxu3 %v1774_v26  ;;  %v853_v0 = vld [vmem:[#allocation3] sm:$0xf] }
  0x6a   : > { %806 = vmatpush.bf16.msrb.mxu2 %v1758_v46 }
  0x6b   : > { %1297 = vmatpush.bf16.msrb.mxu1 %v1791_v38 }
  0x6c   : > { %1274 = vmatpush.bf16.msrb.mxu0 %v1783_v44 }
  0x6d   : > { %1253 = vmatpush.bf16.msrb.mxu3 %v1773_v33 }
  0x6e   : > { %807 = vmatpush.bf16.msrb.mxu2 %v1757_v52  ;;  %v388_v52 = vld [vmem:[#allocation3 + $0x10] sm:$0x2] }
  0x6f   : > { %1298 = vmatpush.bf16.msrb.mxu1 %v1790_v47  ;;  %v389_v54 = vsel %vm2271_vm7, 0, %v388_v52 }
  0x70   : > { %390 = vst [vmem:[#allocation3 + $0x10] sm:$0x2] %v389_v54  ;;  %1275 = vmatpush.bf16.msrb.mxu0 %v1782_v53 }
  0x71   : > { %1254 = vmatpush.bf16.msrb.mxu3 %v1772_v42 }
  0x73   : > { %790 = vmatmul.bf16.gmra.mxu1 %v1500_v57 }
  0x74   : > { %1276 = vmatpush.bf16.msrb.mxu0 %v1781_v2 }
  0x75   : > { %1255 = vmatpush.bf16.msrb.mxu3 %v1771_v48 }
  0x77   : > { %808 = vmatmul.bf16.vlgmr.msrb.gmra.mxu2 %v1492_v58  ;;  %v1789_v58 = vld [vmem:[#allocation11 + $0x90] sm:$0xff] }
  0x78   : > { %1299 = vmatpush.bf16.msrb.mxu1 %v1789_v58  ;;  %1277 = vmatpush.bf16.msrb.mxu0 %v1780_v13 }
  0x7c   : > { %1300 = vmatpush.bf16.msrb.mxu1 %v1788_v62  ;;  %1278 = vmatpush.bf16.msrb.mxu0 %v1779_v20 }
  0x80   : > { %1301 = vmatpush.bf16.msrb.mxu1 %v1787_v18 }
  0x87   : > { %813 = vmatmul.bf16.gmra.mxu2 %v1504_v61 }
  0x97   : > { %818 = vmatmul.bf16.gmra.mxu2 %v600_v1 }
  0xd2   : > { %v763_v16 = vpop.f32.mrf.mxu0 }
  0xd3   : > { %v764_v28 = vadd.f32 %v2332_v22, %v763_v16 }
  0xda   : > { %v765_v30 = vpop.f32.mrf.mxu0 }
  0xdb   : > { %v766_v45 = vadd.f32 %v2332_v22, %v765_v30 }
  0xe0   : > { %v786_v10 = vpop.f32.mrf.mxu1 }
  0xe1   : > { %v787_v34 = vadd.f32 %v786_v10, %v764_v28 }
  0xe2   : > { %v768_v50 = vpop.f32.mrf.mxu0 }
  0xe3   : > { %v769_v61 = vadd.f32 %v2332_v22, %v768_v50  ;;  %v888_v50 = vld [vmem:[#allocation3 + $0x8] sm:$0xe] }
  0xe8   : > { %v788_v40 = vpop.f32.mrf.mxu1 }
  0xe9   : > { %v2325_v12 = vpop.f32.mrf.mxu3  ;;  %v789_v55 = vadd.f32 %v788_v40, %v766_v45 }
  0xea   : > { %v2323_v11 = vpop.f32.mrf.mxu2  ;;  %v770_v17 = vpop.f32.mrf.mxu0 }
  0xeb   : > { %v771_v26 = vadd.f32 %v2332_v22, %v770_v17  ;;  %v774_v5 = vadd.f32 %v2332_v22, %v2323_v11 }
  0xed   : > { %v797_v2 = vadd.f32 %v2325_v12, %v774_v5 }
  0xf0   : > { %v791_v1 = vpop.f32.mrf.mxu1 }
  0xf1   : > { %v798_v27 = vpop.f32.mrf.mxu3  ;;  %v792_v8 = vadd.f32 %v791_v1, %v769_v61 }
  0xf2   : > { %v775_v25 = vpop.f32.mrf.mxu2 }
  0xf3   : > { %v857_v25 = vld [vmem:[#allocation3 + $0x8] sm:$0x1] }
  0xf8   : > { %v793_v30 = vpop.f32.mrf.mxu1 }
  0xf9   : > { %v794_v42 = vadd.f32 %v793_v30, %v771_v26 }
  0xfa   : > { %v809_v41 = vpop.f32.mrf.mxu2 }
  0xfb   : > { %v810_v43 = vadd.f32 %v809_v41, %v787_v34 }
  0xfd   : > { %v823_v46 = vmax.f32 %v810_v43, 0.0 }
  0xff   : > { %v828_v49 = vpack.c.bf16 %v823_v46, %v823_v46 }
 0x101   : > { %v834_v56 = vshrl.u32 %v828_v49, 16  ;;  %v837_v60 = vshll.u32 %v828_v49, 16 }
 0x102   : > { %v811_v57 = vpop.f32.mrf.mxu2 }
 0x103   : > { %v836_v59 = vrot.slane %v834_v56, 7  ;;  %v812_v63 = vadd.f32 %v811_v57, %v789_v55 }
 0x105   : > { %v839_v3 = vor.u32 %v837_v60, %v836_v59  ;;  %v824_v6 = vmax.f32 %v812_v63, 0.0  ;;  %v840_v35 = vrot.slane %v836_v59, 4 }
 0x107   : > { %v854_v7 = vsel %vm2242_vm12, %v839_v3, %v853_v0  ;;  %v829_v9 = vpack.c.bf16 %v824_v6, %v824_v6 }
 0x108   : > { %855 = vst [vmem:[#allocation3] sm:$0xf] %v854_v7 }
 0x109   : > { %v842_v16 = vshrl.u32 %v829_v9, 16  ;;  %v845_v10 = vshll.u32 %v829_v9, 16 }
 0x10a   : > { %v814_v19 = vpop.f32.mrf.mxu2 }
 0x10b   : > { %v844_v21 = vrot.slane %v842_v16, 7  ;;  %v815_v24 = vadd.f32 %v814_v19, %v792_v8 }
 0x10d   : > { %v847_v27 = vor.u32 %v845_v10, %v844_v21  ;;  %v849_v28 = vrot.slane %v844_v21, 4  ;;  %v825_v4 = vmax.f32 %v815_v24, 0.0 }
 0x10f   : > { %v848_v31 = vsel %vm2248_vm13, %v840_v35, %v847_v27  ;;  %v858_v33 = vsel %vm2208_vm5, %v849_v28, %v857_v25  ;;  %v830_v34 = vpack.c.bf16 %v825_v4, %v825_v4  ;;  %v895_v36 = vld [vmem:[#allocation3] sm:$0xf] }
 0x110   : > { %v905_v38 = vld [vmem:[#allocation3] sm:$0xf]  ;;  %856 = vst [vmem:[#allocation3 + $0x4] sm:$0xf] %v848_v31 }
 0x111   : > { %v911_v40 = vshrl.u32 %v905_v38, 16  ;;  %v914_v41 = vshll.u32 %v905_v38, 16  ;;  %859 = vst [vmem:[#allocation3 + $0x8] sm:$0x1] %v858_v33  ;;  %v861_v43 = vshrl.u32 %v830_v34, 16  ;;  %v864_v48 = vshll.u32 %v830_v34, 16 }
 0x112   : > { %v816_v44 = vpop.f32.mrf.mxu2  ;;  %900 = vst [vmem:[#allocation5] sm:$0xf] %v895_v36  ;;  %v969_v54 = vld [vmem:[#allocation3] sm:$0xe] }
 0x113   : > { %v913_v45 = vrot.slane %v911_v40, 4  ;;  %v916_v46 = vrot.slane %v914_v41, 5  ;;  %v863_v47 = vrot.slane %v861_v43, 7  ;;  %v817_v49 = vadd.f32 %v816_v44, %v794_v42 }
 0x114   : > { %v1601_v63 = vrot.slane %v969_v54, 9 }
 0x115   : > { %v866_v52 = vor.u32 %v864_v48, %v863_v47  ;;  %v826_v53 = vmax.f32 %v817_v49, 0.0  ;;  %v917_v55 = vor.u32 %v916_v46, %v913_v45  ;;  %v867_v16 = vrot.slane %v863_v47, 4  ;;  %v892_v46 = vld [vmem:[#allocation3 + $0x10] sm:$0x3] }
 0x117   : > { %v906_v56 = vld [vmem:[#allocation3 + $0x4] sm:$0xf]  ;;  %v889_v57 = vsel %vm2257_vm15, %v866_v52, %v888_v50  ;;  %v831_v58 = vpack.c.bf16 %v826_v53, %v826_v53  ;;  %v918_v62 = vrot.slane %v917_v55, 4 }
 0x118   : > { %v896_v59 = vld [vmem:[#allocation3 + $0x4] sm:$0xf]  ;;  %v924_v61 = vshrl.u32 %v906_v56, 16  ;;  %890 = vst [vmem:[#allocation3 + $0x8] sm:$0xe] %v889_v57  ;;  %v920_v1 = vshll.u32 %v906_v56, 16 }
 0x119   : > { %v970_v60 = vld [vmem:[#allocation3 + $0x4] sm:$0xf]  ;;  %v869_v3 = vshrl.u32 %v831_v58, 16  ;;  %901 = vst [vmem:[#allocation5 + $0xc] sm:$0xf] %v896_v59  ;;  %v872_v8 = vshll.u32 %v831_v58, 16 }
 0x11a   : > { %v981_v0 = vrot.slane %v970_v60, 5  ;;  %v926_v11 = vrot.slane %v924_v61, 4  ;;  %v819_v22 = vpop.f32.mrf.mxu2  ;;  %v922_v51 = vrot.slane %v920_v1, 5  ;;  %v1604_v12 = vld [vmem:[#allocation5] sm:$0xf] }
 0x11b   : > { %v871_v7 = vrot.slane %v869_v3, 7  ;;  %v820_v9 = vadd.f32 %v819_v22, %v797_v2 }
 0x11c   : > { %v982_v6 = vsel %vm2293_vm6, %v1601_v63, %v981_v0  ;;  %v923_v13 = vsel %vm2299_vm8, %v918_v62, %v922_v51  ;;  %v983_v19 = vrot.slane %v981_v0, 4  ;;  %v927_v20 = vor.u32 %v926_v11, %v922_v51 }
 0x11d   : > { %998 = vst [vmem:[#allocation5 + $0x8] sm:$0xf] %v982_v6  ;;  %v874_v17 = vor.u32 %v872_v8, %v871_v7  ;;  %v827_v18 = vmax.f32 %v820_v9, 0.0  ;;  %v876_v44 = vrot.slane %v871_v7, 4 }
 0x11e   : > { %964 = vst [vmem:[#allocation5 + $0x4] sm:$0xf] %v923_v13  ;;  %v928_v36 = vrot.slane %v927_v20, 4 }
 0x11f   : > { %v875_v21 = vsel %vm2248_vm13, %v867_v16, %v874_v17  ;;  %v832_v10 = vpack.c.bf16 %v827_v18, %v827_v18  ;;  %v971_v24 = vld [vmem:[#allocation3 + $0x8] sm:$0xf] }
 0x120   : > { %v907_v25 = vld [vmem:[#allocation3 + $0x8] sm:$0xf]  ;;  %891 = vst [vmem:[#allocation3 + $0xc] sm:$0xf] %v875_v21  ;;  %v1766_v35 = vld [vmem:[#allocation5 + $0x8] sm:$0xf0] }
 0x121   : > { %v897_v26 = vld [vmem:[#allocation3 + $0x8] sm:$0xf]  ;;  %v984_v27 = vrot.slane %v971_v24, 5  ;;  %v930_v28 = vshll.u32 %v907_v25, 16  ;;  %v878_v4 = vshrl.u32 %v832_v10, 16  ;;  %v1605_v30 = vor.u32 %v1766_v35, %v1604_v12 }
 0x122   : > { %902 = vst [vmem:[#allocation5 + $0x18] sm:$0xf] %v897_v26  ;;  %v934_v31 = vshrl.u32 %v907_v25, 16  ;;  %v821_v33 = vpop.f32.mrf.mxu2  ;;  %v881_v41 = vshll.u32 %v832_v10, 16 }
 0x123   : > { %v985_v34 = vsel %vm2293_vm6, %v983_v19, %v984_v27  ;;  %v932_v38 = vrot.slane %v930_v28, 5  ;;  %v880_v40 = vrot.slane %v878_v4, 7  ;;  %1256 = vmatmul.bf16.vlgmr.msrb.gmra.mxu3 %v1605_v30  ;;  %v986_v53 = vrot.slane %v984_v27, 4 }
 0x124   : > { %999 = vst [vmem:[#allocation5 + $0x14] sm:$0xf] %v985_v34  ;;  %v936_v42 = vrot.slane %v934_v31, 4  ;;  %v1612_v57 = vld [vmem:[#allocation5 + $0x8] sm:$0xf] }
 0x125   : > { %v933_v43 = vsel %vm2299_vm8, %v928_v36, %v932_v38  ;;  %v883_v45 = vor.u32 %v881_v41, %v880_v40  ;;  %v1765_v0 = vld [vmem:[#allocation5 + $0x4] sm:$0xf] }
 0x126   : > { %965 = vst [vmem:[#allocation5 + $0x10] sm:$0xf] %v933_v43  ;;  %v937_v5 = vor.u32 %v936_v42, %v932_v38 }
 0x127   : > { %v884_v47 = vsel %vm2248_vm13, %v876_v44, %v883_v45  ;;  %v898_v48 = vld [vmem:[#allocation3 + $0xc] sm:$0xf] }
 0x128   : > { %v972_v49 = vld [vmem:[#allocation3 + $0xc] sm:$0xf]  ;;  %v893_v52 = vsel %vm2232_vm10, %v884_v47, %v892_v46  ;;  %903 = vst [vmem:[#allocation5 + $0x24] sm:$0xf] %v898_v48  ;;  %v938_v60 = vrot.slane %v937_v5, 4 }
 0x129   : > { %v908_v50 = vld [vmem:[#allocation3 + $0xc] sm:$0xf]  ;;  %v987_v54 = vrot.slane %v972_v49, 5  ;;  %894 = vst [vmem:[#allocation3 + $0x10] sm:$0x3] %v893_v52 }
 0x12a   : > { %v940_v55 = vshll.u32 %v908_v50, 16  ;;  %v944_v56 = vshrl.u32 %v908_v50, 16  ;;  %v1616_v11 = vld [vmem:[#allocation5 + $0x18] sm:$0xf]  ;;  %v1887_v44 = vld [vmem:[%s2428_s4] ss:$0 sm:$0xff] }
 0x12b   : > { %v1767_v58 = vld [vmem:[#allocation5 + $0x10] sm:$0xf0]  ;;  %v988_v59 = vsel %vm2293_vm6, %v986_v53, %v987_v54  ;;  %v989_v8 = vrot.slane %v987_v54, 4 }
 0x12c   : > { %v1613_v37 = vor.u32 %v1767_v58, %v1612_v57  ;;  %1000 = vst [vmem:[#allocation5 + $0x20] sm:$0xf] %v988_v59  ;;  %v942_v61 = vrot.slane %v940_v55, 5  ;;  %v946_v63 = vrot.slane %v944_v56, 4 }
 0x12d   : > { %v1606_v1 = vld [vmem:[#allocation5 + $0xc] sm:$0xf0] }
 0x12e   : > { %1302 = vmatmul.bf16.vlgmr.msrb.gmra.mxu1 %v1613_v37  ;;  %v1609_v29 = vor.u32 %v1765_v0, %v1606_v1  ;;  %v943_v2 = vsel %vm2299_vm8, %v938_v60, %v942_v61  ;;  %v947_v3 = vor.u32 %v946_v63, %v942_v61  ;;  %v1339_v61 = vrot.slane %v2228_v23, 6  ;;  %v1723_v0 = vld [vmem:[%s2190_s16 + $0x18] sm:$0xff] }
 0x12f   : > { %966 = vst [vmem:[#allocation5 + $0x1c] sm:$0xf] %v943_v2  ;;  %v1769_v22 = vld [vmem:[#allocation5 + $0x20] sm:$0xf0] }
 0x130   : > { %1279 = vmatmul.bf16.vlgmr.msrb.gmra.mxu0 %v1609_v29  ;;  %v1617_v6 = vor.u32 %v1769_v22, %v1616_v11  ;;  %v973_v62 = vld [vmem:[#allocation3 + $0x10] sm:$0x3]  ;;  %v948_v17 = vrot.slane %v947_v3, 4  ;;  %v1340_v3 = vrot.slane %v1723_v0, 6 }
 0x131   : > { %v909_v51 = vld [vmem:[#allocation3 + $0x10] sm:$0x3]  ;;  %v990_v9 = vrot.slane %v973_v62, 5 }
 0x132   : > { %v899_v7 = vld [vmem:[#allocation3 + $0x10] sm:$0x1]  ;;  %v950_v13 = vshll.u32 %v909_v51, 16  ;;  %v954_v16 = vshrl.u32 %v909_v51, 16  ;;  %v1341_v62 = vsel %vm2458_vm4, %v1339_v61, %v1340_v3 }
 0x133   : > { %904 = vst [vmem:[#allocation5 + $0x30] sm:$0x1] %v899_v7  ;;  %1261 = vmatmul.bf16.gmra.mxu3 %v1617_v6  ;;  %v991_v18 = vsel %vm2293_vm6, %v989_v8, %v990_v9  ;;  %v992_v20 = vrot.slane %v990_v9, 4  ;;  %v1624_v25 = vld [vmem:[#allocation5 + $0x20] sm:$0xf] }
 0x134   : > { %v952_v12 = vrot.slane %v950_v13, 5  ;;  %v956_v19 = vrot.slane %v954_v16, 4  ;;  %1001 = vst [vmem:[#allocation5 + $0x2c] sm:$0xf] %v991_v18 }
 0x135   : > { %1002 = vst [vmem:[#allocation5 + $0x38] sm:$0x1] %v992_v20 }
 0x136   : > { %v953_v21 = vsel %vm2299_vm8, %v948_v17, %v952_v12  ;;  %v957_v10 = vor.u32 %v956_v19, %v952_v12  ;;  %v1768_v27 = vld [vmem:[#allocation5 + $0x1c] sm:$0xf] }
 0x137   : > { %967 = vst [vmem:[#allocation5 + $0x28] sm:$0xf] %v953_v21 }
 0x138   : > { %v958_v24 = vrot.slane %v957_v10, 4 }
 0x13a   : > { %968 = vst [vmem:[#allocation5 + $0x34] sm:$0x1] %v958_v24 }
 0x13b   : > { %v1770_v26 = vld [vmem:[#allocation5 + $0x28] sm:$0xf0] }
 0x13c   : > { %v1625_v35 = vor.u32 %v1770_v26, %v1624_v25  ;;  %v1012_v33 = vld [vmem:[#allocation5 + $0x38] sm:$0x1] }
 0x13d   : > { %v1085_v39 = vunpack.c.l.b16 %v1012_v33 }
 0x13e   : > { %v1618_v28 = vld [vmem:[#allocation5 + $0x24] sm:$0xf0]  ;;  %1307 = vmatmul.bf16.gmra.mxu1 %v1625_v35 }
 0x13f   : > { %v1621_v32 = vor.u32 %v1768_v27, %v1618_v28  ;;  %v1094_v36 = vpack.c.b16 %v1085_v39, %v1085_v39 }
 0x141   : > { %1284 = vmatmul.bf16.gmra.mxu0 %v1621_v32  ;;  %v1011_v4 = vld [vmem:[#allocation5 + $0x30] sm:$0x11] }
 0x142   : > { %v1083_v30 = vunpack.c.l.b16 %v1011_v4  ;;  %v1084_v34 = vunpack.c.h.b16 %v1011_v4 }
 0x144   : > { %v1092_v31 = vpack.c.b16 %v1083_v30, %v1083_v30  ;;  %v1093_v38 = vpack.c.b16 %v1084_v34, %v1084_v34 }
 0x146   : > { %1266 = vmatmul.bf16.gmra.mxu3 %v1092_v31 }
 0x14e   : > { %1312 = vmatmul.bf16.gmra.mxu1 %v1094_v36 }
 0x151   : > { %1289 = vmatmul.bf16.gmra.mxu0 %v1093_v38 }
 0x1a6   : > { %v1257_v40 = vpop.f32.mrf.mxu3 }
 0x1ab   : > { %v1303_v41 = vpop.f32.mrf.mxu1 }
 0x1ad   : > { %v1280_v42 = vpop.f32.mrf.mxu0 }
 0x1ae   : > { %v1281_v43 = vadd.f32 %v1280_v42, %v1257_v40  ;;  %v1259_v45 = vpop.f32.mrf.mxu3 }
 0x1b0   : > { %v1304_v46 = vadd.f32 %v1303_v41, %v1281_v43 }
 0x1b2   : > { %v1321_v47 = vadd.f32 %v1887_v44, %v1304_v46 }
 0x1b3   : > { %v1305_v48 = vpop.f32.mrf.mxu1 }
 0x1b4   : > { %v1325_v49 = vadd.f32 %v1321_v47, %v2218_v14 }
 0x1b5   : > { %v1282_v50 = vpop.f32.mrf.mxu0 }
 0x1b6   : > { %v1327_v5 = vmax.f32 %v1325_v49, 0.0  ;;  %v1283_v52 = vadd.f32 %v1282_v50, %v1259_v45  ;;  %v1262_v53 = vpop.f32.mrf.mxu3 }
 0x1b8   : > { %1329 = vst [vmem:[%s2379_s11] sm:$0xff] %v1327_v5  ;;  %v1306_v54 = vadd.f32 %v1305_v48, %v1283_v52 }
 0x1ba   : > { %v1322_v55 = vadd.f32 %v1887_v44, %v1306_v54 }
 0x1bb   : > { %v1308_v57 = vpop.f32.mrf.mxu1 }
 0x1bc   : > { %v1326_v56 = vadd.f32 %v1322_v55, %v2221_v15 }
 0x1be   : > { %v1328_v58 = vmax.f32 %v1326_v56, 0.0  ;;  %v1285_v59 = vpop.f32.mrf.mxu0  ;;  %v1264_v37 = vpop.f32.mrf.mxu3 }
 0x1bf   : > { %v1286_v14 = vadd.f32 %v1285_v59, %v1262_v53 }
 0x1c0   : > { %1330 = vst [vmem:[%s2379_s11 + $0x8] sm:$0xff] %v1328_v58 }
 0x1c1   : > { %v1309_v60 = vadd.f32 %v1308_v57, %v1286_v14 }
 0x1c3   : > { %v1331_v63 = vadd.f32 %v1887_v44, %v1309_v60  ;;  %v1310_v1 = vpop.f32.mrf.mxu1 }
 0x1c5   : > { %v1345_v29 = vadd.f32 %v1339_v61, %v1331_v63 }
 0x1c6   : > { %v1287_v2 = vpop.f32.mrf.mxu0 }
 0x1c7   : > { %v1348_v11 = vmax.f32 %v1345_v29, 0.0  ;;  %v1288_v15 = vadd.f32 %v1287_v2, %v1264_v37 }
 0x1c9   : > { %1724 = vst [vmem:[%s2379_s11 + $0xe] sm:$0xfc] %v1348_v11  ;;  %v1311_v22 = vadd.f32 %v1310_v1, %v1288_v15  ;;  %v1267_v6 = vpop.f32.mrf.mxu3 }
 0x1cb   : > { %v1332_v51 = vadd.f32 %v1887_v44, %v1311_v22  ;;  %v1313_v7 = vpop.f32.mrf.mxu1 }
 0x1cd   : > { %v1346_v8 = vadd.f32 %v1341_v62, %v1332_v51 }
 0x1ce   : > { %v1290_v23 = vpop.f32.mrf.mxu0 }
 0x1cf   : > { %v1349_v9 = vmax.f32 %v1346_v8, 0.0  ;;  %v1291_v13 = vadd.f32 %v1290_v23, %v1267_v6 }
 0x1d1   : > { %1725 = vst [vmem:[%s2379_s11 + $0x16] sm:$0xff] %v1349_v9  ;;  %v1314_v16 = vadd.f32 %v1313_v7, %v1291_v13  ;;  %v1269_v17 = vpop.f32.mrf.mxu3 }
 0x1d3   : > { %v1333_v18 = vadd.f32 %v1887_v44, %v1314_v16  ;;  %v1315_v12 = vpop.f32.mrf.mxu1 }
 0x1d5   : > { %v1347_v19 = vadd.f32 %v1340_v3, %v1333_v18 }
 0x1d6   : > { %v1292_v20 = vpop.f32.mrf.mxu0 }
 0x1d7   : > { %v1350_v21 = vmax.f32 %v1347_v19, 0.0 }
 0x1d9   : > { %1726 = vst [vmem:[%s2379_s11 + $0x1e] sm:$0x3] %v1350_v21 }
 0x1da   : > { %2005 = shalt.err (!%p2002_p10)
}
 0x1db   : > { %s2056_s8 = smov 128   ;;  %s2057_s10 = smov 8  }
 0x1dc   : > { %1823 = dma.vmem_to_hbm [thread:$0]  (%p2154_p3), %s1370_s6, 512, %s1372_s26, %s1356_s22, %s2056_s8, %s2056_s8, %s2057_s10  }
 0x1dd PF: > { %s1386_s11 = sand.u32 1, %s2036_s18   ;;  %p2459_p12 = scmp.ge.s32.totalorder %s2048_s21, 2 }
 0x1de   : > { %s1387_s12 = scalar_lea.sflag [#allocation8], %s1386_s11 }
 0x1df   : > { %p1837_p13 = pnand %p2459_p12, %p2123_p6 }
 0x1e1   : > { %p1838_p0 = pneg %p1837_p13 }
 0x1e3   : > { %2031 = dma.done.wait (%p1838_p0), %s1387_s12, 512  }
 0x1e4   : > { %2033 = vsyncadd (%p1838_p0), %s1387_s12, 4294966784  ;;  %p19_p5 = scmp.ge.s32.totalorder %s2144_s14, 4   ;;  %s2460_s18 = smov %s2040_s19 }
 0x1e5   : > { %s2461_s19 = smov %s2044_s20  ;;  %s2462_s20 = smov %s2160_s23 }
 0x1e6   : > { %s2463_s21 = smov %s2144_s14  ;;  %21 = sbr.rel (!%p19_p5) target bundleno = 6 (0x6), region = 95 }
 0x1eb   :  { %1393 = vsyncpa [#allocation7], 1 }
 0x1ec   :  { %1395 = vsyncpa [#allocation7 + $0x1], 1 }
 0x1ed   :  { %1396 = vsyncpa [#allocation10], 1 }
 0x1ee   :  { %1397 = vsyncpa [#allocation8], 1 }
 0x1ef   :  { %1399 = vsyncpa [#allocation8 + $0x1], 1 }

</bundles_post_ra>
